<compile_context>
chip_gen: v5e
topology: v5e:2x2
jax: 0.10.0
libtpu: 0.0.40
codegen_flags: <defaults>
</compile_context>

<pallas_src>
import functools
import math

import jax
import jax.numpy as jnp
from jax.experimental import pallas as pl
from jax.experimental.pallas import tpu as pltpu


_LANE = 128
_SUBLANE = 16                       # safe sublane multiple for f32 and bf16
_VMEM_BUDGET = 40 * 1024 * 1024     # tile-footprint budget (fits v7x 64 MiB)
_VMEM_LIMIT = 56 * 1024 * 1024      # explicit scoped-VMEM limit for Mosaic


def _round_up(x, m):
    return ((x + m - 1) // m) * m


# ----------------------------------------------------------------------------
# Kernel
# ----------------------------------------------------------------------------
def _linear_kernel(x_ref, w_ref, b_ref, o_ref, acc_ref):
    k = pl.program_id(1)

    @pl.when(k == 0)
    def _():
        acc_ref[...] = jnp.zeros_like(acc_ref)

    # MXU matmul, f32 accumulation (inputs may be bf16).
    acc_ref[...] += jnp.dot(x_ref[...], w_ref[...],
                            preferred_element_type=jnp.float32)

    @pl.when(k == pl.num_programs(1) - 1)
    def _():
        # Bias add stays in f32 (v5e has no bf16 VPU path); cast on store.
        o_ref[...] = (acc_ref[...] + b_ref[...]).astype(o_ref.dtype)


# ----------------------------------------------------------------------------
# Tiling heuristics
# ----------------------------------------------------------------------------
def _choose_tiles(n, f_pad, c_pad, in_bytes, tm=None, tk=None):
    # --- K (feature) tile: a multiple of 128 that divides f_pad, <= 1024. ---
    if tk is None:
        tk = f_pad
        if tk > 1024:
            tk = 128
            for j in range(f_pad // 128, 0, -1):
                cand = 128 * j
                if cand <= 1024 and f_pad % cand == 0:
                    tk = cand
                    break
    assert f_pad % tk == 0, "tk must divide the padded feature dim"

    # --- Row tile: big (amortize ~0.35us/step), but keep >=2 grid steps when
    #     rows are plentiful so v7x's two TensorCores both get work. ---
    if tm is None:
        tm = 1024
    if tm >= n:
        tm = n
        if n >= 256:
            tm = _round_up(pl.cdiv(n, 2), _SUBLANE)
    else:
        tm = max(_SUBLANE, (tm // _SUBLANE) * _SUBLANE)

    def footprint(tm_, tk_):
        x_bytes = 2 * tm_ * tk_ * in_bytes          # double-buffered x tile
        w_bytes = 2 * tk_ * c_pad * in_bytes        # double-buffered W tile
        o_bytes = 2 * tm_ * c_pad * 4               # double-buffered out tile
        acc_bytes = tm_ * c_pad * 4                 # f32 accumulator scratch
        return x_bytes + w_bytes + o_bytes + acc_bytes

    while footprint(tm, tk) > _VMEM_BUDGET and tm > 64:
        tm = max(_SUBLANE, _round_up(tm // 2, _SUBLANE))
        if tm >= n:
            tm = n
            break
    return tm, tk


# ----------------------------------------------------------------------------
# Parameter prep (do this ONCE, outside the training/eval loop)
# ----------------------------------------------------------------------------
def prepare_params(weight, bias, compute_dtype=jnp.bfloat16):
    """PyTorch (C, F) weight -> padded (F_pad, C_pad) transposed weight in the
    matmul compute dtype, plus a (1, C_pad) f32 bias. Done once so the per-call
    path has no HBM-level transpose/pad of the weight."""
    c, f = weight.shape
    f_pad = _round_up(f, _LANE)
    c_pad = _round_up(c, _LANE)
    w_t = jnp.zeros((f_pad, c_pad), dtype=compute_dtype)
    w_t = w_t.at[:f, :c].set(weight.T.astype(compute_dtype))
    b2d = jnp.zeros((1, c_pad), dtype=jnp.float32)
    b2d = b2d.at[0, :c].set(bias.astype(jnp.float32))
    return w_t, b2d, c


# ----------------------------------------------------------------------------
# Forward
# ----------------------------------------------------------------------------
@functools.partial(jax.jit, static_argnames=("num_classes", "tm", "tk"))
def logistic_regression_apply(x, w_t_pad, b_pad, num_classes, *, tm=None, tk=None):
    """x: (N, F); w_t_pad: (F_pad, C_pad); b_pad: (1, C_pad). Returns (N, C)."""
    n, f = x.shape
    f_pad, c_pad = w_t_pad.shape
    in_dtype = w_t_pad.dtype
    out_dtype = x.dtype

    # Cast activations to the compute dtype and zero-pad features (exact).
    x_c = x.astype(in_dtype)
    if f_pad != f:
        x_c = jnp.pad(x_c, ((0, 0), (0, f_pad - f)))

    tm, tk = _choose_tiles(n, f_pad, c_pad, jnp.dtype(in_dtype).itemsize, tm, tk)
    grid = (pl.cdiv(n, tm), f_pad // tk)

    out = pl.pallas_call(
        _linear_kernel,
        out_shape=jax.ShapeDtypeStruct((n, c_pad), out_dtype),
        grid_spec=pltpu.PrefetchScalarGridSpec(
            num_scalar_prefetch=0,
            grid=grid,
            in_specs=[
                pl.BlockSpec((tm, tk), lambda i, k: (i, k)),       # x row/K tile
                pl.BlockSpec((tk, c_pad), lambda i, k: (k, 0)),    # weight K tile
                pl.BlockSpec((1, c_pad), lambda i, k: (0, 0)),     # bias (resident)
            ],
            out_specs=pl.BlockSpec((tm, c_pad), lambda i, k: (i, 0)),
            scratch_shapes=[pltpu.VMEM((tm, c_pad), jnp.float32)],
        ),
        compiler_params=pltpu.CompilerParams(
            dimension_semantics=("parallel", "arbitrary"),
            vmem_limit_bytes=_VMEM_LIMIT,
        ),
    )(x_c, w_t_pad, b_pad)

    return out[:, :num_classes]


def logistic_regression_forward(x, weight, bias, *, compute_dtype=jnp.bfloat16,
                                tm=None, tk=None):
    """Convenience wrapper matching the PyTorch module: weight (C, F), bias (C,).
    In a real training loop, call prepare_params once and reuse the result."""
    w_t_pad, b_pad, c = prepare_params(weight, bias, compute_dtype)
    return logistic_regression_apply(x, w_t_pad, b_pad, c, tm=tm, tk=tk)


# ----------------------------------------------------------------------------
# Init mirroring the PyTorch module
# ----------------------------------------------------------------------------
def init_params(key, num_features, num_classes, dtype=jnp.float32):
    """weight: xavier_uniform_ (shape (C, F)); bias: U(-1/sqrt(F), 1/sqrt(F))."""
    kw, kb = jax.random.split(key)
    bound_w = math.sqrt(6.0 / (num_features + num_classes))
    weight = jax.random.uniform(
        kw, (num_classes, num_features), dtype=dtype, minval=-bound_w, maxval=bound_w
    )
    bound_b = 1.0 / math.sqrt(num_features)
    bias = jax.random.uniform(
        kb, (num_classes,), dtype=dtype, minval=-bound_b, maxval=bound_b
    )
    return weight, bias


if __name__ == "__main__":
    key = jax.random.PRNGKey(0)
    kx, kp = jax.random.split(key)

    N, num_features, num_classes = 8, 32, 16
    x = jax.random.normal(kx, (N, num_features), dtype=jnp.float32)
    weight, bias = init_params(kp, num_features, num_classes)

    z_ref = x @ weight.T + bias

    # Exact f32 compute path.
    z32 = logistic_regression_forward(x, weight, bias, compute_dtype=jnp.float32)
    z32 = jax.block_until_ready(z32)
    assert z32.shape == (N, num_classes)
    assert jnp.allclose(z32, z_ref, atol=1e-5, rtol=1e-5)

    # Default fast path: bf16 inputs, f32 MXU accumulate + f32 bias add.
    zbf = logistic_regression_forward(x, weight, bias)
    zbf = jax.block_until_ready(zbf)
    assert zbf.shape == (N, num_classes)
    assert jnp.allclose(zbf, z_ref, atol=5e-2, rtol=5e-2)

    print("KERNEL_OK")
</pallas_src>

<mosaic_0001>
module attributes {stable_mosaic.version = 11 : i64} {
  func.func @_linear_kernel(%arg0: i32, %arg1: i32, %arg2: memref<8x128xf32, #tpu.memory_space<vmem>>, %arg3: memref<128x128xf32, #tpu.memory_space<vmem>>, %arg4: memref<1x128xf32, #tpu.memory_space<vmem>>, %arg5: memref<8x128xf32, #tpu.memory_space<vmem>>, %arg6: memref<8x128xf32, #tpu.memory_space<vmem>>) attributes {dimension_semantics = [#tpu.dimension_semantics<parallel>, #tpu.dimension_semantics<arbitrary>], iteration_bounds = array<i64: 1, 1>, scalar_prefetch = 0 : i64, scratch_operands = 1 : i64, tpu.core_type = #tpu.core_type<tc>, window_params = [{transform_indices = @transform_0, window_bounds = array<i64: 8, 128>}, {transform_indices = @transform_1, window_bounds = array<i64: 128, 128>}, {pipeline_mode = #tpu.pipeline_mode<synchronous>, transform_indices = @transform_2, window_bounds = array<i64: 1, 128>}, {transform_indices = @transform_3, window_bounds = array<i64: 8, 128>}]} {
    %c0_i32 = arith.constant 0 : i32
    %0 = arith.cmpi eq, %arg1, %c0_i32 : i32
    %1 = arith.extui %0 : i1 to i32
    %c0_i32_0 = arith.constant 0 : i32
    %2 = arith.cmpi ne, %1, %c0_i32_0 : i32
    scf.if %2 {
      %cst_10 = arith.constant 0.000000e+00 : f32
      %12 = vector.broadcast %cst_10 : f32 to vector<8x128xf32>
      %c0_11 = arith.constant 0 : index
      %c0_12 = arith.constant 0 : index
      %13 = vector.load %arg6[%c0_11, %c0_12] : memref<8x128xf32, #tpu.memory_space<vmem>>, vector<8x128xf32>
      tpu.vector_store %arg6[%c0_11, %c0_12], %12 {strides = array<i32>} : memref<8x128xf32, #tpu.memory_space<vmem>>, vector<8x128xf32>,
    } else {
    }
    %c0 = arith.constant 0 : index
    %c0_1 = arith.constant 0 : index
    %3 = vector.load %arg6[%c0, %c0_1] : memref<8x128xf32, #tpu.memory_space<vmem>>, vector<8x128xf32>
    %c0_2 = arith.constant 0 : index
    %c0_3 = arith.constant 0 : index
    %4 = vector.load %arg2[%c0_2, %c0_3] : memref<8x128xf32, #tpu.memory_space<vmem>>, vector<8x128xf32>
    %c0_4 = arith.constant 0 : index
    %c0_5 = arith.constant 0 : index
    %5 = vector.load %arg3[%c0_4, %c0_5] : memref<128x128xf32, #tpu.memory_space<vmem>>, vector<128x128xf32>
    %cst = arith.constant dense<0.000000e+00> : vector<8x128xf32>
    %6 = tpu.matmul %4, %5, %cst {dimension_numbers = #tpu.dot_dimension_numbers<[1], [0], [0], [1], [0, 0, 1, 1], [], []>} : vector<8x128xf32>, vector<128x128xf32>, vector<8x128xf32> -> vector<8x128xf32>
    %7 = arith.addf %3, %6 : vector<8x128xf32>
    %c0_6 = arith.constant 0 : index
    %c0_7 = arith.constant 0 : index
    %8 = vector.load %arg6[%c0_6, %c0_7] : memref<8x128xf32, #tpu.memory_space<vmem>>, vector<8x128xf32>
    tpu.vector_store %arg6[%c0_6, %c0_7], %7 {strides = array<i32>} : memref<8x128xf32, #tpu.memory_space<vmem>>, vector<8x128xf32>,
    %c0_i32_8 = arith.constant 0 : i32
    %9 = arith.cmpi eq, %arg1, %c0_i32_8 : i32
    %10 = arith.extui %9 : i1 to i32
    %c0_i32_9 = arith.constant 0 : i32
    %11 = arith.cmpi ne, %10, %c0_i32_9 : i32
    scf.if %11 {
      %c0_10 = arith.constant 0 : index
      %c0_11 = arith.constant 0 : index
      %12 = vector.load %arg6[%c0_10, %c0_11] : memref<8x128xf32, #tpu.memory_space<vmem>>, vector<8x128xf32>
      %c0_12 = arith.constant 0 : index
      %c0_13 = arith.constant 0 : index
      %13 = vector.load %arg4[%c0_12, %c0_13] : memref<1x128xf32, #tpu.memory_space<vmem>>, vector<1x128xf32>
      %14 = vector.broadcast %13 : vector<1x128xf32> to vector<8x128xf32>
      %15 = arith.addf %12, %14 : vector<8x128xf32>
      %c0_14 = arith.constant 0 : index
      %c0_15 = arith.constant 0 : index
      %16 = vector.load %arg5[%c0_14, %c0_15] : memref<8x128xf32, #tpu.memory_space<vmem>>, vector<8x128xf32>
      tpu.vector_store %arg5[%c0_14, %c0_15], %15 {strides = array<i32>} : memref<8x128xf32, #tpu.memory_space<vmem>>, vector<8x128xf32>,
    } else {
    }
    return
  }
  func.func @transform_0(%arg0: i32, %arg1: i32) -> (i32, i32) {
    %c0_i32 = arith.constant 0 : i32
    return %arg0, %arg1 : i32, i32
  }
  func.func @transform_1(%arg0: i32, %arg1: i32) -> (i32, i32) {
    %c0_i32 = arith.constant 0 : i32
    %c0_i32_0 = arith.constant 0 : i32
    return %arg1, %c0_i32 : i32, i32
  }
  func.func @transform_2(%arg0: i32, %arg1: i32) -> (i32, i32) {
    %c0_i32 = arith.constant 0 : i32
    %c0_i32_0 = arith.constant 0 : i32
    %c0_i32_1 = arith.constant 0 : i32
    return %c0_i32, %c0_i32_0 : i32, i32
  }
  func.func @transform_3(%arg0: i32, %arg1: i32) -> (i32, i32) {
    %c0_i32 = arith.constant 0 : i32
    %c0_i32_0 = arith.constant 0 : i32
    return %arg0, %c0_i32 : i32, i32
  }
}

</mosaic_0001>

<bundles_post_ra>
// kernel: logistic_regression_apply.1
= control target key start
LH: loop header
LB: loop body
LE: loop exit
PB: predicated region body
PF: predicated region fallthrough
CT: control target
= control target key end

     0   :  { %8 = vsyncpa [#allocation4], 0  ;;  %s196_s0 = inlined_call_operand.vmem [shape: f32[8,128], index: 0, kind: input, shape index: {}]   ;;  %s197_s1 = inlined_call_operand.hbm [shape: f32[128,128], index: 1, kind: input, shape index: {}]   ;;  %s198_s2 = inlined_call_operand.vmem [shape: f32[1,128], index: 2, kind: input, shape index: {}]   ;;  %s199_s3 = inlined_call_operand.hbm [shape: f32[8,128], index: 3, kind: output, shape index: {}]  }
   0x1   :  { %9 = vsyncpa [#allocation5], 0  ;;  %s16_s14 = sshll.u32 %s197_s1, 4  ;;  %s160_s15 = smov [#allocation3]   ;;  %s17_s14 = int_to_ptr.hbm [resolvable:$true] %s16_s14 }
   0x2   :  { %s18_s16 = sshll.u32 %s160_s15, 4  ;;  %s161_s17 = smov 128   ;;  %s19_s16 = int_to_ptr.vmem [resolvable:$true] %s18_s16 }
   0x3   :  { %s162_s18 = smov 8  }
   0x4   :  { %24 = dma.hbm_to_vmem [thread:$0]  %s17_s14, 2048, %s19_s16, [#allocation4], %s161_s17, %s161_s17, %s162_s18  }
   0x5   :  { %156 = dma.done.wait [#allocation4], 2048  }
   0x6   :  { %157 = vsyncadd [#allocation4], 4294965248  ;;  %v53_v0 = vld [vmem:[#allocation3 + $0x78] sm:$0xff]  ;;  %v52_v1 = vld [vmem:[#allocation3 + $0x70] sm:$0xff]  ;;  %s163_s22 = smov [#allocation6]   ;;  %s93_s26 = sshll.u32 %s199_s3, 4  ;;  %s94_s26 = int_to_ptr.hbm [resolvable:$true] %s93_s26 }
   0x7   :  { %54 = vmatpush.msra.mxu0 %v53_v0  ;;  %v51_v2 = vld [vmem:[#allocation3 + $0x68] sm:$0xff]  ;;  %v50_v3 = vld [vmem:[#allocation3 + $0x60] sm:$0xff]  ;;  %v49_v4 = vld [vmem:[#allocation3 + $0x58] sm:$0xff]  ;;  %s91_s23 = sshll.u32 %s163_s22, 4  ;;  %s92_s23 = int_to_ptr.vmem [resolvable:$true] %s91_s23 }
   0x8   :  { %v48_v5 = vld [vmem:[#allocation3 + $0x50] sm:$0xff]  ;;  %v47_v6 = vld [vmem:[#allocation3 + $0x48] sm:$0xff]  ;;  %v46_v7 = vld [vmem:[#allocation3 + $0x40] sm:$0xff] }
   0x9   :  { %55 = vmatpush.msra.mxu0 %v52_v1  ;;  %v45_v8 = vld [vmem:[#allocation3 + $0x38] sm:$0xff]  ;;  %v44_v9 = vld [vmem:[#allocation3 + $0x30] sm:$0xff]  ;;  %v43_v10 = vld [vmem:[#allocation3 + $0x28] sm:$0xff] }
   0xa   :  { %v42_v11 = vld [vmem:[#allocation3 + $0x20] sm:$0xff]  ;;  %v41_v12 = vld [vmem:[#allocation3 + $0x18] sm:$0xff]  ;;  %v40_v13 = vld [vmem:[#allocation3 + $0x10] sm:$0xff] }
   0xb   :  { %56 = vmatpush.msra.mxu0 %v51_v2  ;;  %v39_v14 = vld [vmem:[#allocation3 + $0x8] sm:$0xff]  ;;  %v38_v15 = vld [vmem:[#allocation3] sm:$0xff] }
   0xc   :  { %v37_v16 = vld [vmem:[%s196_s0] sm:$0xff] }
   0xd   :  { %57 = vmatpush.msra.mxu0 %v50_v3  ;;  %v107_v17 = vld [vmem:[%s198_s2] ss:$0 sm:$0xff] }
   0xf   :  { %58 = vmatpush.msra.mxu0 %v49_v4 }
  0x11   :  { %59 = vmatpush.msra.mxu0 %v48_v5 }
  0x13   :  { %60 = vmatpush.msra.mxu0 %v47_v6 }
  0x15   :  { %61 = vmatpush.msra.mxu0 %v46_v7 }
  0x17   :  { %62 = vmatpush.msra.mxu0 %v45_v8 }
  0x19   :  { %63 = vmatpush.msra.mxu0 %v44_v9 }
  0x1b   :  { %64 = vmatpush.msra.mxu0 %v43_v10 }
  0x1d   :  { %65 = vmatpush.msra.mxu0 %v42_v11 }
  0x1f   :  { %66 = vmatpush.msra.mxu0 %v41_v12 }
  0x21   :  { %67 = vmatpush.msra.mxu0 %v40_v13 }
  0x23   :  { %68 = vmatpush.msra.mxu0 %v39_v14 }
  0x25   :  { %69 = vmatpush.msra.mxu0 %v38_v15 }
  0x26   :  { %70 = vmatmul.f32.vlgmr.msra.gmra.mxu0 %v37_v16 }
  0xa3   :  { %v71_v18 = vpop.f32.mrf.mxu0 }
  0xa4   :  { %v84_v19 = vadd.f32 %v107_v17, %v71_v18 }
  0xa6   :  { %85 = vst [vmem:[#allocation6] sm:$0xff] %v84_v19 }
  0xa7   :  { %96 = dma.vmem_to_hbm [thread:$0]  %s92_s23, 128, %s94_s26, [#allocation5]  }
  0xa8   :  { %158 = dma.done.wait [#allocation5], 128  }
  0xa9   :  { %159 = vsyncadd [#allocation5], 4294967168 }
  0xaa   :  { %101 = vsyncpa [#allocation4], 1 }
  0xab   :  { %102 = vsyncpa [#allocation5], 1 }

</bundles_post_ra>
